<compile_context>
chip_gen: v5e
topology: v5e:2x2
jax: 0.10.0
libtpu: 0.0.40
codegen_flags: <defaults>
</compile_context>

<pallas_src>
import functools

import jax
import jax.numpy as jnp
import numpy as np
from jax.experimental import pallas as pl
from jax.experimental.pallas import tpu as pltpu


def lstm_last_kernel(len_ref, gx_ref, whh_ref, out_ref):
    """Whole-sequence LSTM recurrence + last-unpadded-state select, one call.

    len_ref : (B, 1)     int32  sequence lengths (clamped to [1, L] in wrapper)
    gx_ref  : (L, B, 4H) f32    precomputed x_t @ W_ih^T + (b_ih + b_hh), time-major
    whh_ref : (H, 4H)    f32    W_hh^T (recurrent weights, PyTorch gate order i,f,g,o)
    out_ref : (B, H)     f32    h at t = lengths[b] - 1
    """
    L, B, H4 = gx_ref.shape
    H = H4 // 4

    lens = len_ref[...]                       # (B, 1) int32
    whh = whh_ref[...]                        # (H, 4H) f32

    zeros_h = jnp.zeros((B, H), jnp.float32)

    def step(t, carry):
        h, c, out = carry                     # all (B, H)
        # Per-step critical path: one (B,H)x(H,4H) MXU op + one full-vreg EUP pass.
        gates = gx_ref[t] + jnp.dot(h, whh, preferred_element_type=jnp.float32)
        # One full-(B,4H)-vreg sigmoid covers i/f/o (g lanes are recomputed below).
        sg = jax.nn.sigmoid(gates)
        i_g = sg[:, 0 * H:1 * H]
        f_g = sg[:, 1 * H:2 * H]
        o_g = sg[:, 3 * H:4 * H]
        g_g = jnp.tanh(gates[:, 2 * H:3 * H])
        c_new = f_g * c + i_g * g_g
        h_new = o_g * jnp.tanh(c_new)
        # _select_last_unpadded: keep h at t == lengths[b] - 1 (in-register).
        out = jnp.where(lens == t + 1, h_new, out)
        return h_new, c_new, out

    # Short fixed trip count -> fully unrolled so the LLO scheduler sees it all.
    _, _, out = jax.lax.fori_loop(0, L, step, (zeros_h, zeros_h, zeros_h),
                                  unroll=True)
    out_ref[...] = out                         # single store at the end


def lstm_last_state(gates_x_lbg, lengths, whh_t):
    """gates_x_lbg: [L, B, 4H] f32, lengths: [B] i32, whh_t: [H, 4H] -> [B, H]."""
    L, B, H4 = gates_x_lbg.shape
    H = H4 // 4
    # Clamp only guards out-of-spec lengths (PyTorch pack/gather would raise).
    lengths2d = jnp.clip(lengths.astype(jnp.int32), 1, L).reshape(B, 1)

    return pl.pallas_call(
        lstm_last_kernel,
        out_shape=jax.ShapeDtypeStruct((B, H), jnp.float32),
        grid=(1,),
        in_specs=[
            pl.BlockSpec((B, 1), lambda i: (0, 0)),          # lengths
            pl.BlockSpec((L, B, H4), lambda i: (0, 0, 0)),   # gates_x, all timesteps
            pl.BlockSpec((H, H4), lambda i: (0, 0)),         # W_hh^T
        ],
        out_specs=pl.BlockSpec((B, H), lambda i: (0, 0)),
        compiler_params=pltpu.CompilerParams(
            dimension_semantics=("arbitrary",)),
    )(lengths2d, gates_x_lbg, whh_t)


def token_rnn_forward(tokens, lengths, params, hidden_size):
    """TokenRNN.forward (eval mode, defaults): [B, L] ids -> [B, H]."""
    H = hidden_size
    # Embed (embeddings_dropout=0.0 -> identity).  The sqrt(H) embedding scale
    # is folded into W_ih instead of scaling the [B, L, D] activations.
    x_emb = jnp.take(params["emb"], tokens, axis=0)              # [B, L, D]
    scale = jnp.float32(H) ** 0.5
    wih_t = params["w_ih"].T * scale                             # [D, 4H]
    bias = params["b_ih"] + params["b_hh"]                       # [4H]
    # Hoisted, time-independent input projection: one big matmul, time-major out.
    gates_x = jnp.einsum("bld,dg->lbg", x_emb, wih_t) + bias     # [L, B, 4H]
    whh_t = params["w_hh"].T.astype(jnp.float32)                 # [H, 4H]
    # TODO(synk): rnn dropout(0.1) is identity here (eval-mode inference).
    return lstm_last_state(gates_x, lengths, whh_t)


def _reference_forward(tokens, lengths, params, hidden_size):
    """Plain-JAX reference (lax.scan LSTM) for correctness check."""
    emb = jnp.take(params["emb"], tokens, axis=0) * (jnp.float32(hidden_size) ** 0.5)
    B, L, D = emb.shape
    H = hidden_size
    wih_t, whh_t = params["w_ih"].T, params["w_hh"].T
    b = (params["b_ih"] + params["b_hh"])[None, :]

    def step(carry, x_t):
        h, c = carry
        g = x_t @ wih_t + h @ whh_t + b
        i = jax.nn.sigmoid(g[:, :H])
        f = jax.nn.sigmoid(g[:, H:2 * H])
        gg = jnp.tanh(g[:, 2 * H:3 * H])
        o = jax.nn.sigmoid(g[:, 3 * H:])
        c = f * c + i * gg
        h = o * jnp.tanh(c)
        return (h, c), h

    init = (jnp.zeros((B, H), jnp.float32), jnp.zeros((B, H), jnp.float32))
    _, hs = jax.lax.scan(step, init, jnp.transpose(emb, (1, 0, 2)))  # [L, B, H]
    hs = jnp.transpose(hs, (1, 0, 2))                                # [B, L, H]
    idx = (lengths - 1).astype(jnp.int32)
    return hs[jnp.arange(B), idx]                                    # [B, H]


def make_params(key, vocab_size, emb_dim, hidden_size):
    """Deterministic synthetic parameters (shapes match nn.Embedding + nn.LSTM)."""
    k_emb, k_wih, k_whh, k_bih, k_bhh = jax.random.split(key, 5)
    bound = 1.0 / np.sqrt(hidden_size)
    return {
        "emb": jax.random.normal(k_emb, (vocab_size, emb_dim), jnp.float32) * 0.1,
        "w_ih": jax.random.uniform(k_wih, (4 * hidden_size, emb_dim),
                                   jnp.float32, -bound, bound),
        "w_hh": jax.random.uniform(k_whh, (4 * hidden_size, hidden_size),
                                   jnp.float32, -bound, bound),
        "b_ih": jax.random.uniform(k_bih, (4 * hidden_size,), jnp.float32,
                                   -bound, bound),
        "b_hh": jax.random.uniform(k_bhh, (4 * hidden_size,), jnp.float32,
                                   -bound, bound),
    }


if __name__ == "__main__":
    # Small shapes: B=8, L=8, vocab=50, emb_dim=32, hidden=32 (4H = 128 lanes).
    B, L, V, D, H = 8, 8, 50, 32, 32

    key = jax.random.PRNGKey(0)
    k_tok, k_par = jax.random.split(key)
    tokens = jax.random.randint(k_tok, (B, L), 0, V, dtype=jnp.int32)
    lengths = jnp.array([8, 5, 3, 8, 2, 7, 4, 6], dtype=jnp.int32)
    params = make_params(k_par, V, D, H)

    fwd = jax.jit(functools.partial(token_rnn_forward, hidden_size=H))
    out = fwd(tokens, lengths, params)
    jax.block_until_ready(out)
    assert out.shape == (B, H) and out.dtype == jnp.float32

    ref = _reference_forward(tokens, lengths, params, H)
    np.testing.assert_allclose(np.asarray(out), np.asarray(ref),
                               rtol=2e-2, atol=2e-2)

    print("KERNEL_OK")
</pallas_src>

<mosaic_0001>
module attributes {stable_mosaic.version = 11 : i64} {
  func.func @lstm_last_kernel(%arg0: i32, %arg1: memref<8x1xi32, #tpu.memory_space<vmem>>, %arg2: memref<8x8x128xf32, #tpu.memory_space<vmem>>, %arg3: memref<32x128xf32, #tpu.memory_space<vmem>>, %arg4: memref<8x32xf32, #tpu.memory_space<vmem>>) attributes {dimension_semantics = [#tpu.dimension_semantics<arbitrary>], iteration_bounds = array<i64: 1>, scalar_prefetch = 0 : i64, scratch_operands = 0 : i64, tpu.core_type = #tpu.core_type<tc>, window_params = [{pipeline_mode = #tpu.pipeline_mode<synchronous>, transform_indices = @transform_0, window_bounds = array<i64: 8, 1>}, {pipeline_mode = #tpu.pipeline_mode<synchronous>, transform_indices = @transform_1, window_bounds = array<i64: 8, 8, 128>}, {pipeline_mode = #tpu.pipeline_mode<synchronous>, transform_indices = @transform_2, window_bounds = array<i64: 32, 128>}, {pipeline_mode = #tpu.pipeline_mode<synchronous>, transform_indices = @transform_3, window_bounds = array<i64: 8, 32>}]} {
    %c0 = arith.constant 0 : index
    %c0_0 = arith.constant 0 : index
    %0 = vector.load %arg1[%c0, %c0_0] : memref<8x1xi32, #tpu.memory_space<vmem>>, vector<8x1xi32>
    %c0_1 = arith.constant 0 : index
    %c0_2 = arith.constant 0 : index
    %1 = vector.load %arg3[%c0_1, %c0_2] : memref<32x128xf32, #tpu.memory_space<vmem>>, vector<32x128xf32>
    %cst = arith.constant 0.000000e+00 : f32
    %2 = vector.broadcast %cst : f32 to vector<8x32xf32>
    %c0_i32 = arith.constant 0 : i32
    %3 = arith.index_cast %c0_i32 : i32 to index
    %c0_3 = arith.constant 0 : index
    %c0_4 = arith.constant 0 : index
    %4 = vector.load %arg2[%3, %c0_3, %c0_4] : memref<8x8x128xf32, #tpu.memory_space<vmem>>, vector<1x8x128xf32>
    %5 = vector.shape_cast %4 : vector<1x8x128xf32> to vector<8x128xf32>
    %cst_5 = arith.constant dense<0.000000e+00> : vector<8x128xf32>
    %6 = tpu.matmul %2, %1, %cst_5 {dimension_numbers = #tpu.dot_dimension_numbers<[1], [0], [0], [1], [0, 0, 1, 1], [], []>} : vector<8x32xf32>, vector<32x128xf32>, vector<8x128xf32> -> vector<8x128xf32>
    %7 = arith.addf %5, %6 : vector<8x128xf32>
    %8 = arith.negf %7 : vector<8x128xf32>
    %9 = math.exp %8 : vector<8x128xf32>
    %cst_6 = arith.constant 1.000000e+00 : f32
    %10 = vector.broadcast %cst_6 : f32 to vector<8x128xf32>
    %11 = arith.addf %10, %9 : vector<8x128xf32>
    %12 = arith.divf %10, %11 : vector<8x128xf32>
    %13 = vector.extract_strided_slice %12 {offsets = [0, 0], sizes = [8, 32], strides = [1, 1]} : vector<8x128xf32> to vector<8x32xf32>
    %14 = vector.extract_strided_slice %12 {offsets = [0, 32], sizes = [8, 32], strides = [1, 1]} : vector<8x128xf32> to vector<8x32xf32>
    %15 = vector.extract_strided_slice %12 {offsets = [0, 96], sizes = [8, 32], strides = [1, 1]} : vector<8x128xf32> to vector<8x32xf32>
    %16 = vector.extract_strided_slice %7 {offsets = [0, 64], sizes = [8, 32], strides = [1, 1]} : vector<8x128xf32> to vector<8x32xf32>
    %17 = math.tanh %16 : vector<8x32xf32>
    %18 = arith.mulf %14, %2 : vector<8x32xf32>
    %19 = arith.mulf %13, %17 : vector<8x32xf32>
    %20 = arith.addf %18, %19 : vector<8x32xf32>
    %21 = math.tanh %20 : vector<8x32xf32>
    %22 = arith.mulf %15, %21 : vector<8x32xf32>
    %c1_i32 = arith.constant 1 : i32
    %23 = arith.addi %c0_i32, %c1_i32 : i32
    %24 = vector.broadcast %23 : i32 to vector<8x1xi32>
    %25 = arith.cmpi eq, %0, %24 : vector<8x1xi32>
    %26 = vector.shape_cast %25 : vector<8x1xi1> to vector<8x1xi1>
    %27 = vector.broadcast %26 : vector<8x1xi1> to vector<8x32xi1>
    %28 = arith.select %27, %22, %2 : vector<8x32xi1>, vector<8x32xf32>
    %c1_i32_7 = arith.constant 1 : i32
    %29 = arith.index_cast %c1_i32_7 : i32 to index
    %c0_8 = arith.constant 0 : index
    %c0_9 = arith.constant 0 : index
    %30 = vector.load %arg2[%29, %c0_8, %c0_9] : memref<8x8x128xf32, #tpu.memory_space<vmem>>, vector<1x8x128xf32>
    %31 = vector.shape_cast %30 : vector<1x8x128xf32> to vector<8x128xf32>
    %cst_10 = arith.constant dense<0.000000e+00> : vector<8x128xf32>
    %32 = tpu.matmul %22, %1, %cst_10 {dimension_numbers = #tpu.dot_dimension_numbers<[1], [0], [0], [1], [0, 0, 1, 1], [], []>} : vector<8x32xf32>, vector<32x128xf32>, vector<8x128xf32> -> vector<8x128xf32>
    %33 = arith.addf %31, %32 : vector<8x128xf32>
    %34 = arith.negf %33 : vector<8x128xf32>
    %35 = math.exp %34 : vector<8x128xf32>
    %cst_11 = arith.constant 1.000000e+00 : f32
    %36 = vector.broadcast %cst_11 : f32 to vector<8x128xf32>
    %37 = arith.addf %36, %35 : vector<8x128xf32>
    %38 = arith.divf %36, %37 : vector<8x128xf32>
    %39 = vector.extract_strided_slice %38 {offsets = [0, 0], sizes = [8, 32], strides = [1, 1]} : vector<8x128xf32> to vector<8x32xf32>
    %40 = vector.extract_strided_slice %38 {offsets = [0, 32], sizes = [8, 32], strides = [1, 1]} : vector<8x128xf32> to vector<8x32xf32>
    %41 = vector.extract_strided_slice %38 {offsets = [0, 96], sizes = [8, 32], strides = [1, 1]} : vector<8x128xf32> to vector<8x32xf32>
    %42 = vector.extract_strided_slice %33 {offsets = [0, 64], sizes = [8, 32], strides = [1, 1]} : vector<8x128xf32> to vector<8x32xf32>
    %43 = math.tanh %42 : vector<8x32xf32>
    %44 = arith.mulf %40, %20 : vector<8x32xf32>
    %45 = arith.mulf %39, %43 : vector<8x32xf32>
    %46 = arith.addf %44, %45 : vector<8x32xf32>
    %47 = math.tanh %46 : vector<8x32xf32>
    %48 = arith.mulf %41, %47 : vector<8x32xf32>
    %c1_i32_12 = arith.constant 1 : i32
    %49 = arith.addi %c1_i32_7, %c1_i32_12 : i32
    %50 = vector.broadcast %49 : i32 to vector<8x1xi32>
    %51 = arith.cmpi eq, %0, %50 : vector<8x1xi32>
    %52 = vector.shape_cast %51 : vector<8x1xi1> to vector<8x1xi1>
    %53 = vector.broadcast %52 : vector<8x1xi1> to vector<8x32xi1>
    %54 = arith.select %53, %48, %28 : vector<8x32xi1>, vector<8x32xf32>
    %c2_i32 = arith.constant 2 : i32
    %55 = arith.index_cast %c2_i32 : i32 to index
    %c0_13 = arith.constant 0 : index
    %c0_14 = arith.constant 0 : index
    %56 = vector.load %arg2[%55, %c0_13, %c0_14] : memref<8x8x128xf32, #tpu.memory_space<vmem>>, vector<1x8x128xf32>
    %57 = vector.shape_cast %56 : vector<1x8x128xf32> to vector<8x128xf32>
    %cst_15 = arith.constant dense<0.000000e+00> : vector<8x128xf32>
    %58 = tpu.matmul %48, %1, %cst_15 {dimension_numbers = #tpu.dot_dimension_numbers<[1], [0], [0], [1], [0, 0, 1, 1], [], []>} : vector<8x32xf32>, vector<32x128xf32>, vector<8x128xf32> -> vector<8x128xf32>
    %59 = arith.addf %57, %58 : vector<8x128xf32>
    %60 = arith.negf %59 : vector<8x128xf32>
    %61 = math.exp %60 : vector<8x128xf32>
    %cst_16 = arith.constant 1.000000e+00 : f32
    %62 = vector.broadcast %cst_16 : f32 to vector<8x128xf32>
    %63 = arith.addf %62, %61 : vector<8x128xf32>
    %64 = arith.divf %62, %63 : vector<8x128xf32>
    %65 = vector.extract_strided_slice %64 {offsets = [0, 0], sizes = [8, 32], strides = [1, 1]} : vector<8x128xf32> to vector<8x32xf32>
    %66 = vector.extract_strided_slice %64 {offsets = [0, 32], sizes = [8, 32], strides = [1, 1]} : vector<8x128xf32> to vector<8x32xf32>
    %67 = vector.extract_strided_slice %64 {offsets = [0, 96], sizes = [8, 32], strides = [1, 1]} : vector<8x128xf32> to vector<8x32xf32>
    %68 = vector.extract_strided_slice %59 {offsets = [0, 64], sizes = [8, 32], strides = [1, 1]} : vector<8x128xf32> to vector<8x32xf32>
    %69 = math.tanh %68 : vector<8x32xf32>
    %70 = arith.mulf %66, %46 : vector<8x32xf32>
    %71 = arith.mulf %65, %69 : vector<8x32xf32>
    %72 = arith.addf %70, %71 : vector<8x32xf32>
    %73 = math.tanh %72 : vector<8x32xf32>
    %74 = arith.mulf %67, %73 : vector<8x32xf32>
    %c1_i32_17 = arith.constant 1 : i32
    %75 = arith.addi %c2_i32, %c1_i32_17 : i32
    %76 = vector.broadcast %75 : i32 to vector<8x1xi32>
    %77 = arith.cmpi eq, %0, %76 : vector<8x1xi32>
    %78 = vector.shape_cast %77 : vector<8x1xi1> to vector<8x1xi1>
    %79 = vector.broadcast %78 : vector<8x1xi1> to vector<8x32xi1>
    %80 = arith.select %79, %74, %54 : vector<8x32xi1>, vector<8x32xf32>
    %c3_i32 = arith.constant 3 : i32
    %81 = arith.index_cast %c3_i32 : i32 to index
    %c0_18 = arith.constant 0 : index
    %c0_19 = arith.constant 0 : index
    %82 = vector.load %arg2[%81, %c0_18, %c0_19] : memref<8x8x128xf32, #tpu.memory_space<vmem>>, vector<1x8x128xf32>
    %83 = vector.shape_cast %82 : vector<1x8x128xf32> to vector<8x128xf32>
    %cst_20 = arith.constant dense<0.000000e+00> : vector<8x128xf32>
    %84 = tpu.matmul %74, %1, %cst_20 {dimension_numbers = #tpu.dot_dimension_numbers<[1], [0], [0], [1], [0, 0, 1, 1], [], []>} : vector<8x32xf32>, vector<32x128xf32>, vector<8x128xf32> -> vector<8x128xf32>
    %85 = arith.addf %83, %84 : vector<8x128xf32>
    %86 = arith.negf %85 : vector<8x128xf32>
    %87 = math.exp %86 : vector<8x128xf32>
    %cst_21 = arith.constant 1.000000e+00 : f32
    %88 = vector.broadcast %cst_21 : f32 to vector<8x128xf32>
    %89 = arith.addf %88, %87 : vector<8x128xf32>
    %90 = arith.divf %88, %89 : vector<8x128xf32>
    %91 = vector.extract_strided_slice %90 {offsets = [0, 0], sizes = [8, 32], strides = [1, 1]} : vector<8x128xf32> to vector<8x32xf32>
    %92 = vector.extract_strided_slice %90 {offsets = [0, 32], sizes = [8, 32], strides = [1, 1]} : vector<8x128xf32> to vector<8x32xf32>
    %93 = vector.extract_strided_slice %90 {offsets = [0, 96], sizes = [8, 32], strides = [1, 1]} : vector<8x128xf32> to vector<8x32xf32>
    %94 = vector.extract_strided_slice %85 {offsets = [0, 64], sizes = [8, 32], strides = [1, 1]} : vector<8x128xf32> to vector<8x32xf32>
    %95 = math.tanh %94 : vector<8x32xf32>
    %96 = arith.mulf %92, %72 : vector<8x32xf32>
    %97 = arith.mulf %91, %95 : vector<8x32xf32>
    %98 = arith.addf %96, %97 : vector<8x32xf32>
    %99 = math.tanh %98 : vector<8x32xf32>
    %100 = arith.mulf %93, %99 : vector<8x32xf32>
    %c1_i32_22 = arith.constant 1 : i32
    %101 = arith.addi %c3_i32, %c1_i32_22 : i32
    %102 = vector.broadcast %101 : i32 to vector<8x1xi32>
    %103 = arith.cmpi eq, %0, %102 : vector<8x1xi32>
    %104 = vector.shape_cast %103 : vector<8x1xi1> to vector<8x1xi1>
    %105 = vector.broadcast %104 : vector<8x1xi1> to vector<8x32xi1>
    %106 = arith.select %105, %100, %80 : vector<8x32xi1>, vector<8x32xf32>
    %c4_i32 = arith.constant 4 : i32
    %107 = arith.index_cast %c4_i32 : i32 to index
    %c0_23 = arith.constant 0 : index
    %c0_24 = arith.constant 0 : index
    %108 = vector.load %arg2[%107, %c0_23, %c0_24] : memref<8x8x128xf32, #tpu.memory_space<vmem>>, vector<1x8x128xf32>
    %109 = vector.shape_cast %108 : vector<1x8x128xf32> to vector<8x128xf32>
    %cst_25 = arith.constant dense<0.000000e+00> : vector<8x128xf32>
    %110 = tpu.matmul %100, %1, %cst_25 {dimension_numbers = #tpu.dot_dimension_numbers<[1], [0], [0], [1], [0, 0, 1, 1], [], []>} : vector<8x32xf32>, vector<32x128xf32>, vector<8x128xf32> -> vector<8x128xf32>
    %111 = arith.addf %109, %110 : vector<8x128xf32>
    %112 = arith.negf %111 : vector<8x128xf32>
    %113 = math.exp %112 : vector<8x128xf32>
    %cst_26 = arith.constant 1.000000e+00 : f32
    %114 = vector.broadcast %cst_26 : f32 to vector<8x128xf32>
    %115 = arith.addf %114, %113 : vector<8x128xf32>
    %116 = arith.divf %114, %115 : vector<8x128xf32>
    %117 = vector.extract_strided_slice %116 {offsets = [0, 0], sizes = [8, 32], strides = [1, 1]} : vector<8x128xf32> to vector<8x32xf32>
    %118 = vector.extract_strided_slice %116 {offsets = [0, 32], sizes = [8, 32], strides = [1, 1]} : vector<8x128xf32> to vector<8x32xf32>
    %119 = vector.extract_strided_slice %116 {offsets = [0, 96], sizes = [8, 32], strides = [1, 1]} : vector<8x128xf32> to vector<8x32xf32>
    %120 = vector.extract_strided_slice %111 {offsets = [0, 64], sizes = [8, 32], strides = [1, 1]} : vector<8x128xf32> to vector<8x32xf32>
    %121 = math.tanh %120 : vector<8x32xf32>
    %122 = arith.mulf %118, %98 : vector<8x32xf32>
    %123 = arith.mulf %117, %121 : vector<8x32xf32>
    %124 = arith.addf %122, %123 : vector<8x32xf32>
    %125 = math.tanh %124 : vector<8x32xf32>
    %126 = arith.mulf %119, %125 : vector<8x32xf32>
    %c1_i32_27 = arith.constant 1 : i32
    %127 = arith.addi %c4_i32, %c1_i32_27 : i32
    %128 = vector.broadcast %127 : i32 to vector<8x1xi32>
    %129 = arith.cmpi eq, %0, %128 : vector<8x1xi32>
    %130 = vector.shape_cast %129 : vector<8x1xi1> to vector<8x1xi1>
    %131 = vector.broadcast %130 : vector<8x1xi1> to vector<8x32xi1>
    %132 = arith.select %131, %126, %106 : vector<8x32xi1>, vector<8x32xf32>
    %c5_i32 = arith.constant 5 : i32
    %133 = arith.index_cast %c5_i32 : i32 to index
    %c0_28 = arith.constant 0 : index
    %c0_29 = arith.constant 0 : index
    %134 = vector.load %arg2[%133, %c0_28, %c0_29] : memref<8x8x128xf32, #tpu.memory_space<vmem>>, vector<1x8x128xf32>
    %135 = vector.shape_cast %134 : vector<1x8x128xf32> to vector<8x128xf32>
    %cst_30 = arith.constant dense<0.000000e+00> : vector<8x128xf32>
    %136 = tpu.matmul %126, %1, %cst_30 {dimension_numbers = #tpu.dot_dimension_numbers<[1], [0], [0], [1], [0, 0, 1, 1], [], []>} : vector<8x32xf32>, vector<32x128xf32>, vector<8x128xf32> -> vector<8x128xf32>
    %137 = arith.addf %135, %136 : vector<8x128xf32>
    %138 = arith.negf %137 : vector<8x128xf32>
    %139 = math.exp %138 : vector<8x128xf32>
    %cst_31 = arith.constant 1.000000e+00 : f32
    %140 = vector.broadcast %cst_31 : f32 to vector<8x128xf32>
    %141 = arith.addf %140, %139 : vector<8x128xf32>
    %142 = arith.divf %140, %141 : vector<8x128xf32>
    %143 = vector.extract_strided_slice %142 {offsets = [0, 0], sizes = [8, 32], strides = [1, 1]} : vector<8x128xf32> to vector<8x32xf32>
    %144 = vector.extract_strided_slice %142 {offsets = [0, 32], sizes = [8, 32], strides = [1, 1]} : vector<8x128xf32> to vector<8x32xf32>
    %145 = vector.extract_strided_slice %142 {offsets = [0, 96], sizes = [8, 32], strides = [1, 1]} : vector<8x128xf32> to vector<8x32xf32>
    %146 = vector.extract_strided_slice %137 {offsets = [0, 64], sizes = [8, 32], strides = [1, 1]} : vector<8x128xf32> to vector<8x32xf32>
    %147 = math.tanh %146 : vector<8x32xf32>
    %148 = arith.mulf %144, %124 : vector<8x32xf32>
    %149 = arith.mulf %143, %147 : vector<8x32xf32>
    %150 = arith.addf %148, %149 : vector<8x32xf32>
    %151 = math.tanh %150 : vector<8x32xf32>
    %152 = arith.mulf %145, %151 : vector<8x32xf32>
    %c1_i32_32 = arith.constant 1 : i32
    %153 = arith.addi %c5_i32, %c1_i32_32 : i32
    %154 = vector.broadcast %153 : i32 to vector<8x1xi32>
    %155 = arith.cmpi eq, %0, %154 : vector<8x1xi32>
    %156 = vector.shape_cast %155 : vector<8x1xi1> to vector<8x1xi1>
    %157 = vector.broadcast %156 : vector<8x1xi1> to vector<8x32xi1>
    %158 = arith.select %157, %152, %132 : vector<8x32xi1>, vector<8x32xf32>
    %c6_i32 = arith.constant 6 : i32
    %159 = arith.index_cast %c6_i32 : i32 to index
    %c0_33 = arith.constant 0 : index
    %c0_34 = arith.constant 0 : index
    %160 = vector.load %arg2[%159, %c0_33, %c0_34] : memref<8x8x128xf32, #tpu.memory_space<vmem>>, vector<1x8x128xf32>
    %161 = vector.shape_cast %160 : vector<1x8x128xf32> to vector<8x128xf32>
    %cst_35 = arith.constant dense<0.000000e+00> : vector<8x128xf32>
    %162 = tpu.matmul %152, %1, %cst_35 {dimension_numbers = #tpu.dot_dimension_numbers<[1], [0], [0], [1], [0, 0, 1, 1], [], []>} : vector<8x32xf32>, vector<32x128xf32>, vector<8x128xf32> -> vector<8x128xf32>
    %163 = arith.addf %161, %162 : vector<8x128xf32>
    %164 = arith.negf %163 : vector<8x128xf32>
    %165 = math.exp %164 : vector<8x128xf32>
    %cst_36 = arith.constant 1.000000e+00 : f32
    %166 = vector.broadcast %cst_36 : f32 to vector<8x128xf32>
    %167 = arith.addf %166, %165 : vector<8x128xf32>
    %168 = arith.divf %166, %167 : vector<8x128xf32>
    %169 = vector.extract_strided_slice %168 {offsets = [0, 0], sizes = [8, 32], strides = [1, 1]} : vector<8x128xf32> to vector<8x32xf32>
    %170 = vector.extract_strided_slice %168 {offsets = [0, 32], sizes = [8, 32], strides = [1, 1]} : vector<8x128xf32> to vector<8x32xf32>
    %171 = vector.extract_strided_slice %168 {offsets = [0, 96], sizes = [8, 32], strides = [1, 1]} : vector<8x128xf32> to vector<8x32xf32>
    %172 = vector.extract_strided_slice %163 {offsets = [0, 64], sizes = [8, 32], strides = [1, 1]} : vector<8x128xf32> to vector<8x32xf32>
    %173 = math.tanh %172 : vector<8x32xf32>
    %174 = arith.mulf %170, %150 : vector<8x32xf32>
    %175 = arith.mulf %169, %173 : vector<8x32xf32>
    %176 = arith.addf %174, %175 : vector<8x32xf32>
    %177 = math.tanh %176 : vector<8x32xf32>
    %178 = arith.mulf %171, %177 : vector<8x32xf32>
    %c1_i32_37 = arith.constant 1 : i32
    %179 = arith.addi %c6_i32, %c1_i32_37 : i32
    %180 = vector.broadcast %179 : i32 to vector<8x1xi32>
    %181 = arith.cmpi eq, %0, %180 : vector<8x1xi32>
    %182 = vector.shape_cast %181 : vector<8x1xi1> to vector<8x1xi1>
    %183 = vector.broadcast %182 : vector<8x1xi1> to vector<8x32xi1>
    %184 = arith.select %183, %178, %158 : vector<8x32xi1>, vector<8x32xf32>
    %c7_i32 = arith.constant 7 : i32
    %185 = arith.index_cast %c7_i32 : i32 to index
    %c0_38 = arith.constant 0 : index
    %c0_39 = arith.constant 0 : index
    %186 = vector.load %arg2[%185, %c0_38, %c0_39] : memref<8x8x128xf32, #tpu.memory_space<vmem>>, vector<1x8x128xf32>
    %187 = vector.shape_cast %186 : vector<1x8x128xf32> to vector<8x128xf32>
    %cst_40 = arith.constant dense<0.000000e+00> : vector<8x128xf32>
    %188 = tpu.matmul %178, %1, %cst_40 {dimension_numbers = #tpu.dot_dimension_numbers<[1], [0], [0], [1], [0, 0, 1, 1], [], []>} : vector<8x32xf32>, vector<32x128xf32>, vector<8x128xf32> -> vector<8x128xf32>
    %189 = arith.addf %187, %188 : vector<8x128xf32>
    %190 = arith.negf %189 : vector<8x128xf32>
    %191 = math.exp %190 : vector<8x128xf32>
    %cst_41 = arith.constant 1.000000e+00 : f32
    %192 = vector.broadcast %cst_41 : f32 to vector<8x128xf32>
    %193 = arith.addf %192, %191 : vector<8x128xf32>
    %194 = arith.divf %192, %193 : vector<8x128xf32>
    %195 = vector.extract_strided_slice %194 {offsets = [0, 0], sizes = [8, 32], strides = [1, 1]} : vector<8x128xf32> to vector<8x32xf32>
    %196 = vector.extract_strided_slice %194 {offsets = [0, 32], sizes = [8, 32], strides = [1, 1]} : vector<8x128xf32> to vector<8x32xf32>
    %197 = vector.extract_strided_slice %194 {offsets = [0, 96], sizes = [8, 32], strides = [1, 1]} : vector<8x128xf32> to vector<8x32xf32>
    %198 = vector.extract_strided_slice %189 {offsets = [0, 64], sizes = [8, 32], strides = [1, 1]} : vector<8x128xf32> to vector<8x32xf32>
    %199 = math.tanh %198 : vector<8x32xf32>
    %200 = arith.mulf %196, %176 : vector<8x32xf32>
    %201 = arith.mulf %195, %199 : vector<8x32xf32>
    %202 = arith.addf %200, %201 : vector<8x32xf32>
    %203 = math.tanh %202 : vector<8x32xf32>
    %204 = arith.mulf %197, %203 : vector<8x32xf32>
    %c1_i32_42 = arith.constant 1 : i32
    %205 = arith.addi %c7_i32, %c1_i32_42 : i32
    %206 = vector.broadcast %205 : i32 to vector<8x1xi32>
    %207 = arith.cmpi eq, %0, %206 : vector<8x1xi32>
    %208 = vector.shape_cast %207 : vector<8x1xi1> to vector<8x1xi1>
    %209 = vector.broadcast %208 : vector<8x1xi1> to vector<8x32xi1>
    %210 = arith.select %209, %204, %184 : vector<8x32xi1>, vector<8x32xf32>
    %c8_i32 = arith.constant 8 : i32
    %c0_43 = arith.constant 0 : index
    %c0_44 = arith.constant 0 : index
    %211 = vector.load %arg4[%c0_43, %c0_44] : memref<8x32xf32, #tpu.memory_space<vmem>>, vector<8x32xf32>
    tpu.vector_store %arg4[%c0_43, %c0_44], %210 {strides = array<i32>} : memref<8x32xf32, #tpu.memory_space<vmem>>, vector<8x32xf32>,
    return
  }
  func.func @transform_0(%arg0: i32) -> (i32, i32) {
    %c0_i32 = arith.constant 0 : i32
    %c0_i32_0 = arith.constant 0 : i32
    %c0_i32_1 = arith.constant 0 : i32
    return %c0_i32, %c0_i32_0 : i32, i32
  }
  func.func @transform_1(%arg0: i32) -> (i32, i32, i32) {
    %c0_i32 = arith.constant 0 : i32
    %c0_i32_0 = arith.constant 0 : i32
    %c0_i32_1 = arith.constant 0 : i32
    %c0_i32_2 = arith.constant 0 : i32
    return %c0_i32, %c0_i32_0, %c0_i32_1 : i32, i32, i32
  }
  func.func @transform_2(%arg0: i32) -> (i32, i32) {
    %c0_i32 = arith.constant 0 : i32
    %c0_i32_0 = arith.constant 0 : i32
    %c0_i32_1 = arith.constant 0 : i32
    return %c0_i32, %c0_i32_0 : i32, i32
  }
  func.func @transform_3(%arg0: i32) -> (i32, i32) {
    %c0_i32 = arith.constant 0 : i32
    %c0_i32_0 = arith.constant 0 : i32
    %c0_i32_1 = arith.constant 0 : i32
    return %c0_i32, %c0_i32_0 : i32, i32
  }
}

</mosaic_0001>

<bundles_post_ra>
// kernel: token_rnn_forward.1
= control target key start
LH: loop header
LB: loop body
LE: loop exit
PB: predicated region body
PF: predicated region fallthrough
CT: control target
= control target key end

     0   :  { %s874_s0 = inlined_call_operand.vmem [shape: s32[8,1], index: 0, kind: input, shape index: {}]   ;;  %s875_s1 = inlined_call_operand.vmem [shape: f32[8,8,128], index: 1, kind: input, shape index: {}]   ;;  %s876_s2 = inlined_call_operand.vmem [shape: f32[32,128], index: 2, kind: input, shape index: {}]   ;;  %s877_s3 = inlined_call_operand.hbm [shape: f32[8,32], index: 3, kind: output, shape index: {}]  }
   0x1   :  { %v19_v0 = vld [vmem:[%s876_s2 + $0x18] sm:$0xff]  ;;  %v18_v1 = vld [vmem:[%s876_s2 + $0x10] sm:$0xff] }
   0x2   :  { %37 = vmatpush.msra.mxu0 %v19_v0  ;;  %109 = vmatpush.msra.mxu1 %v19_v0 }
   0x3   :  { %8 = vsyncpa [#allocation3], 0  ;;  %v17_v2 = vld [vmem:[%s876_s2 + $0x8] sm:$0xff]  ;;  %181 = vmatpush.msra.mxu2 %v19_v0  ;;  %253 = vmatpush.msra.mxu3 %v19_v0  ;;  %v16_v3 = vld [vmem:[%s876_s2] sm:$0xff]  ;;  %v735_v4 = vmov 0.0   ;;  %s736_s21 = smov 64  }
   0x4   :  { %38 = vmatpush.msra.mxu0 %v18_v1  ;;  %110 = vmatpush.msra.mxu1 %v18_v1  ;;  %v20_v5 = vld [vmem:[%s875_s1] sm:$0xff]  ;;  %s737_s22 = smov 32   ;;  %vm21_vm4 = vcmask 261120   ;;  %v616_v31 = vld [vmem:[%s875_s1 + $0x8] sm:$0xff]  ;;  %v619_v57 = vld [vmem:[%s875_s1 + $0x10] sm:$0xff]  ;;  %s606_s14 = sshll.u32 %s877_s3, 4  ;;  %s607_s14 = int_to_ptr.hbm [resolvable:$true] %s606_s14 }
   0x5   :  { %182 = vmatpush.msra.mxu2 %v18_v1  ;;  %254 = vmatpush.msra.mxu3 %v18_v1 }
   0x6   :  { %39 = vmatpush.msra.mxu0 %v17_v2  ;;  %111 = vmatpush.msra.mxu1 %v17_v2 }
   0x7   :  { %183 = vmatpush.msra.mxu2 %v17_v2  ;;  %255 = vmatpush.msra.mxu3 %v17_v2 }
   0x8   :  { %40 = vmatpush.msra.mxu0 %v16_v3  ;;  %112 = vmatpush.msra.mxu1 %v16_v3 }
   0x9   :  { %41 = vmatmul.f32.vlgmr.msra.gmra.mxu0 %v735_v4  ;;  %184 = vmatpush.msra.mxu2 %v16_v3 }
   0xa   :  { %256 = vmatpush.msra.mxu3 %v16_v3  ;;  %325 = vmatpush.msrb.mxu0 %v19_v0 }
   0xb   :  { %397 = vmatpush.msrb.mxu1 %v19_v0  ;;  %469 = vmatpush.msrb.mxu2 %v19_v0 }
   0xc   :  { %326 = vmatpush.msrb.mxu0 %v18_v1  ;;  %541 = vmatpush.msrb.mxu3 %v19_v0 }
   0xd   :  { %398 = vmatpush.msrb.mxu1 %v18_v1  ;;  %470 = vmatpush.msrb.mxu2 %v18_v1 }
   0xe   :  { %327 = vmatpush.msrb.mxu0 %v17_v2  ;;  %542 = vmatpush.msrb.mxu3 %v18_v1 }
   0xf   :  { %399 = vmatpush.msrb.mxu1 %v17_v2  ;;  %471 = vmatpush.msrb.mxu2 %v17_v2 }
  0x10   :  { %328 = vmatpush.msrb.mxu0 %v16_v3  ;;  %543 = vmatpush.msrb.mxu3 %v17_v2 }
  0x11   :  { %400 = vmatpush.msrb.mxu1 %v16_v3  ;;  %472 = vmatpush.msrb.mxu2 %v16_v3 }
  0x12   :  { %544 = vmatpush.msrb.mxu3 %v16_v3 }
  0x86   :  { %v42_v6 = vpop.f32.mrf.mxu0 }
  0x87   :  { %v45_v7 = vadd.f32 %v42_v6, %v20_v5 }
  0x89   :  { %645 = vtanh.f32 %v45_v7  ;;  %v615_v9 = vmul.f32 -1.442695, %v45_v7 }
  0x8b   :  { %647 = vpow2.f32 %v615_v9 }
  0x8f   :  { %v646_v8 = vpop.eup %645 }
  0x90   :  { %68 = vrot.lane.b32.xlu0 %v646_v8, %s736_s21 }
  0x91   :  { %v648_v10 = vpop.eup %647 }
  0x92   :  { %v49_v11 = vadd.f32 1.0, %v648_v10 }
  0x94   :  { %649 = vrcp.f32 %v49_v11  ;;  %v61_v17 = vand.u32 2147483648, %v49_v11  ;;  %vm55_vm1 = vweird.f32 %v49_v11  ;;  %v59_v18 = vand.u32 2147483647, %v49_v11 }
  0x96   :  { %v62_v20 = vor.u32 1.1754944e-38, %v61_v17  ;;  %vm60_vm3 = vcmp.eq.f32.partialorder %v59_v18, 8.507059e+37 }
  0x9a   :  { %v650_v12 = vpop.eup %649 }
  0x9b   :  { %v51_v13 = vmul.f32 %v650_v12, %v49_v11  ;;  %vm56_vm0 = vweird.f32 %v650_v12 }
  0x9c   :  { %vm57_vm2 = vmor %vm55_vm1, %vm56_vm0 }
  0x9d   :  { %v52_v14 = vsub.f32 1.0, %v51_v13 }
  0x9f   :  { %v53_v15 = vmul.f32 %v650_v12, %v52_v14 }
  0xa1   :  { %v54_v16 = vadd.f32 %v650_v12, %v53_v15 }
  0xa3   :  { %v58_v19 = vsel %vm57_vm2, %v650_v12, %v54_v16 }
  0xa4   :  { %v63_v22 = vsel %vm60_vm3, %v62_v20, %v58_v19  ;;  %v622_v19 = vld [vmem:[%s875_s1 + $0x18] sm:$0xff] }
  0xa5   :  { %v66_v24 = vmul.f32 0.0, %v63_v22 }
 0x102   :  { %v69_v21 = vpop.permute.xlu0 %68 }
 0x103   :  { %v71_v23 = vmul.f32 %v69_v21, %v63_v22 }
 0x105   :  { %73 = vrot.lane.b32.xlu0 %v71_v23, %s737_s22 }
 0x177   :  { %v74_v25 = vpop.permute.xlu0 %73 }
 0x178   :  { %v76_v26 = vadd.f32 %v74_v25, %v66_v24 }
 0x17a   :  { %651 = vtanh.f32 %v76_v26 }
 0x180   :  { %v652_v27 = vpop.eup %651 }
 0x181   :  { %79 = vrot.lane.b32.xlu1 %v652_v27, %s736_s21 }
 0x1f3   :  { %v80_v28 = vpop.permute.xlu1 %79 }
 0x1f4   :  { %v778_v29 = vmul.f32 %v80_v28, %v63_v22 }
 0x1f6   :  { %93 = vrot.lane.b32.xlu1 %v778_v29, %s737_s22 }
 0x268   :  { %v94_v30 = vpop.permute.xlu1 %93 }
 0x269   :  { %617 = vmatmul.msk.f32.vlgmr.msra.gmra.mxu1 %vm21_vm4, %v94_v30 }
 0x2e6   :  { %v114_v32 = vpop.f32.mrf.mxu1 }
 0x2e7   :  { %v117_v33 = vadd.f32 %v616_v31, %v114_v32 }
 0x2e9   :  { %653 = vtanh.f32 %v117_v33  ;;  %v618_v35 = vmul.f32 -1.442695, %v117_v33 }
 0x2eb   :  { %655 = vpow2.f32 %v618_v35 }
 0x2ef   :  { %v654_v34 = vpop.eup %653 }
 0x2f0   :  { %140 = vrot.lane.b32.xlu2 %v654_v34, %s736_s21 }
 0x2f1   :  { %v656_v36 = vpop.eup %655 }
 0x2f2   :  { %v121_v37 = vadd.f32 1.0, %v656_v36 }
 0x2f4   :  { %657 = vrcp.f32 %v121_v37  ;;  %v133_v43 = vand.u32 2147483648, %v121_v37  ;;  %vm127_vm6 = vweird.f32 %v121_v37  ;;  %v131_v44 = vand.u32 2147483647, %v121_v37 }
 0x2f6   :  { %v134_v46 = vor.u32 1.1754944e-38, %v133_v43  ;;  %vm132_vm8 = vcmp.eq.f32.partialorder %v131_v44, 8.507059e+37 }
 0x2fa   :  { %v658_v38 = vpop.eup %657 }
 0x2fb   :  { %v123_v39 = vmul.f32 %v658_v38, %v121_v37  ;;  %vm128_vm5 = vweird.f32 %v658_v38 }
 0x2fc   :  { %vm129_vm7 = vmor %vm127_vm6, %vm128_vm5 }
 0x2fd   :  { %v124_v40 = vsub.f32 1.0, %v123_v39 }
 0x2ff   :  { %v125_v41 = vmul.f32 %v658_v38, %v124_v40 }
 0x301   :  { %v126_v42 = vadd.f32 %v658_v38, %v125_v41 }
 0x303   :  { %v130_v45 = vsel %vm129_vm7, %v658_v38, %v126_v42 }
 0x304   :  { %v135_v48 = vsel %vm132_vm8, %v134_v46, %v130_v45  ;;  %v625_v46 = vld [vmem:[%s875_s1 + $0x20] sm:$0xff] }
 0x305   :  { %v138_v50 = vmul.f32 %v135_v48, %v76_v26 }
 0x34a   :  { %v141_v47 = vpop.permute.xlu2 %140 }
 0x34b   :  { %v143_v49 = vmul.f32 %v141_v47, %v135_v48 }
 0x34d   :  { %145 = vrot.lane.b32.xlu2 %v143_v49, %s737_s22 }
 0x3a7   :  { %v146_v51 = vpop.permute.xlu2 %145 }
 0x3a8   :  { %v148_v52 = vadd.f32 %v146_v51, %v138_v50 }
 0x3aa   :  { %659 = vtanh.f32 %v148_v52 }
 0x3b0   :  { %v660_v53 = vpop.eup %659 }
 0x3b1   :  { %151 = vrot.lane.b32.xlu0 %v660_v53, %s736_s21 }
 0x423   :  { %v152_v54 = vpop.permute.xlu0 %151 }
 0x424   :  { %v789_v55 = vmul.f32 %v152_v54, %v135_v48 }
 0x426   :  { %165 = vrot.lane.b32.xlu1 %v789_v55, %s737_s22 }
 0x498   :  { %v166_v56 = vpop.permute.xlu1 %165 }
 0x499   :  { %620 = vmatmul.msk.f32.vlgmr.msra.gmra.mxu2 %vm21_vm4, %v166_v56 }
 0x51c   :  { %v186_v58 = vpop.f32.mrf.mxu2 }
 0x51d   :  { %v189_v59 = vadd.f32 %v619_v57, %v186_v58 }
 0x51f   :  { %661 = vtanh.f32 %v189_v59  ;;  %v621_v61 = vmul.f32 -1.442695, %v189_v59 }
 0x521   :  { %663 = vpow2.f32 %v621_v61 }
 0x525   :  { %v662_v60 = vpop.eup %661 }
 0x526   :  { %212 = vrot.lane.b32.xlu2 %v662_v60, %s736_s21 }
 0x527   :  { %v664_v62 = vpop.eup %663 }
 0x528   :  { %v193_v63 = vadd.f32 1.0, %v664_v62 }
 0x52a   :  { %665 = vrcp.f32 %v193_v63  ;;  %v205_v5 = vand.u32 2147483648, %v193_v63  ;;  %vm199_vm10 = vweird.f32 %v193_v63  ;;  %v203_v6 = vand.u32 2147483647, %v193_v63 }
 0x52c   :  { %v206_v8 = vor.u32 1.1754944e-38, %v205_v5  ;;  %vm204_vm12 = vcmp.eq.f32.partialorder %v203_v6, 8.507059e+37 }
 0x530   :  { %v666_v0 = vpop.eup %665 }
 0x531   :  { %v195_v1 = vmul.f32 %v666_v0, %v193_v63  ;;  %vm200_vm9 = vweird.f32 %v666_v0 }
 0x532   :  { %vm201_vm11 = vmor %vm199_vm10, %vm200_vm9 }
 0x533   :  { %v196_v2 = vsub.f32 1.0, %v195_v1 }
 0x535   :  { %v197_v3 = vmul.f32 %v666_v0, %v196_v2 }
 0x537   :  { %v198_v4 = vadd.f32 %v666_v0, %v197_v3 }
 0x539   :  { %v202_v7 = vsel %vm201_vm11, %v666_v0, %v198_v4 }
 0x53a   :  { %v207_v10 = vsel %vm204_vm12, %v206_v8, %v202_v7 }
 0x53b   :  { %v210_v12 = vmul.f32 %v207_v10, %v148_v52 }
 0x580   :  { %v213_v9 = vpop.permute.xlu2 %212 }
 0x581   :  { %v215_v11 = vmul.f32 %v213_v9, %v207_v10  ;;  %v628_v9 = vld [vmem:[%s875_s1 + $0x28] sm:$0xff] }
 0x583   :  { %217 = vrot.lane.b32.xlu0 %v215_v11, %s737_s22 }
 0x5f5   :  { %v218_v13 = vpop.permute.xlu0 %217 }
 0x5f6   :  { %v220_v14 = vadd.f32 %v218_v13, %v210_v12 }
 0x5f8   :  { %667 = vtanh.f32 %v220_v14 }
 0x5fe   :  { %v668_v15 = vpop.eup %667 }
 0x5ff   :  { %223 = vrot.lane.b32.xlu1 %v668_v15, %s736_s21 }
 0x671   :  { %v224_v16 = vpop.permute.xlu1 %223 }
 0x672   :  { %v800_v17 = vmul.f32 %v224_v16, %v207_v10 }
 0x674   :  { %237 = vrot.lane.b32.xlu2 %v800_v17, %s737_s22 }
 0x6ce   :  { %v238_v18 = vpop.permute.xlu2 %237 }
 0x6cf   :  { %623 = vmatmul.msk.f32.vlgmr.msra.gmra.mxu3 %vm21_vm4, %v238_v18 }
 0x752   :  { %v258_v20 = vpop.f32.mrf.mxu3 }
 0x753   :  { %v261_v21 = vadd.f32 %v622_v19, %v258_v20 }
 0x755   :  { %669 = vtanh.f32 %v261_v21  ;;  %v624_v23 = vmul.f32 -1.442695, %v261_v21 }
 0x757   :  { %671 = vpow2.f32 %v624_v23 }
 0x75b   :  { %v670_v22 = vpop.eup %669 }
 0x75c   :  { %284 = vrot.lane.b32.xlu0 %v670_v22, %s736_s21 }
 0x75d   :  { %v672_v24 = vpop.eup %671 }
 0x75e   :  { %v265_v25 = vadd.f32 1.0, %v672_v24 }
 0x760   :  { %673 = vrcp.f32 %v265_v25  ;;  %v277_v32 = vand.u32 2147483648, %v265_v25  ;;  %vm271_vm14 = vweird.f32 %v265_v25  ;;  %v275_v33 = vand.u32 2147483647, %v265_v25 }
 0x762   :  { %v278_v35 = vor.u32 1.1754944e-38, %v277_v32  ;;  %vm276_vm0 = vcmp.eq.f32.partialorder %v275_v33, 8.507059e+37 }
 0x766   :  { %v674_v26 = vpop.eup %673 }
 0x767   :  { %v267_v27 = vmul.f32 %v674_v26, %v265_v25  ;;  %vm272_vm13 = vweird.f32 %v674_v26 }
 0x768   :  { %vm273_vm15 = vmor %vm271_vm14, %vm272_vm13 }
 0x769   :  { %v268_v28 = vsub.f32 1.0, %v267_v27 }
 0x76b   :  { %v269_v30 = vmul.f32 %v674_v26, %v268_v28 }
 0x76d   :  { %v270_v31 = vadd.f32 %v674_v26, %v269_v30 }
 0x76f   :  { %v274_v34 = vsel %vm273_vm15, %v674_v26, %v270_v31 }
 0x770   :  { %v279_v37 = vsel %vm276_vm0, %v278_v35, %v274_v34 }
 0x771   :  { %v282_v39 = vmul.f32 %v279_v37, %v220_v14 }
 0x7ce   :  { %v285_v36 = vpop.permute.xlu0 %284 }
 0x7cf   :  { %v287_v38 = vmul.f32 %v285_v36, %v279_v37 }
 0x7d1   :  { %289 = vrot.lane.b32.xlu1 %v287_v38, %s737_s22 }
 0x843   :  { %v290_v40 = vpop.permute.xlu1 %289 }
 0x844   :  { %v292_v41 = vadd.f32 %v290_v40, %v282_v39 }
 0x846   :  { %675 = vtanh.f32 %v292_v41 }
 0x84c   :  { %v676_v42 = vpop.eup %675 }
 0x84d   :  { %295 = vrot.lane.b32.xlu2 %v676_v42, %s736_s21 }
 0x8a7   :  { %v296_v43 = vpop.permute.xlu2 %295 }
 0x8a8   :  { %v811_v44 = vmul.f32 %v296_v43, %v279_v37  ;;  %v631_v37 = vld [vmem:[%s875_s1 + $0x30] sm:$0xff] }
 0x8aa   :  { %309 = vrot.lane.b32.xlu0 %v811_v44, %s737_s22 }
 0x91c   :  { %v310_v45 = vpop.permute.xlu0 %309 }
 0x91d   :  { %626 = vmatmul.msk.f32.vlgmr.msrb.gmra.mxu0 %vm21_vm4, %v310_v45 }
 0x99a   :  { %v330_v47 = vpop.f32.mrf.mxu0 }
 0x99b   :  { %v333_v48 = vadd.f32 %v625_v46, %v330_v47 }
 0x99d   :  { %677 = vtanh.f32 %v333_v48  ;;  %v627_v50 = vmul.f32 -1.442695, %v333_v48 }
 0x99f   :  { %679 = vpow2.f32 %v627_v50 }
 0x9a3   :  { %v678_v49 = vpop.eup %677 }
 0x9a4   :  { %356 = vrot.lane.b32.xlu1 %v678_v49, %s736_s21 }
 0x9a5   :  { %v680_v51 = vpop.eup %679 }
 0x9a6   :  { %v337_v52 = vadd.f32 1.0, %v680_v51 }
 0x9a8   :  { %681 = vrcp.f32 %v337_v52  ;;  %v349_v59 = vand.u32 2147483648, %v337_v52  ;;  %vm343_vm2 = vweird.f32 %v337_v52  ;;  %v347_v60 = vand.u32 2147483647, %v337_v52 }
 0x9aa   :  { %v350_v62 = vor.u32 1.1754944e-38, %v349_v59  ;;  %vm348_vm5 = vcmp.eq.f32.partialorder %v347_v60, 8.507059e+37 }
 0x9ae   :  { %v682_v53 = vpop.eup %681 }
 0x9af   :  { %v339_v54 = vmul.f32 %v682_v53, %v337_v52  ;;  %vm344_vm1 = vweird.f32 %v682_v53 }
 0x9b0   :  { %vm345_vm3 = vmor %vm343_vm2, %vm344_vm1 }
 0x9b1   :  { %v340_v56 = vsub.f32 1.0, %v339_v54 }
 0x9b3   :  { %v341_v57 = vmul.f32 %v682_v53, %v340_v56 }
 0x9b5   :  { %v342_v58 = vadd.f32 %v682_v53, %v341_v57 }
 0x9b7   :  { %v346_v61 = vsel %vm345_vm3, %v682_v53, %v342_v58 }
 0x9b8   :  { %v351_v0 = vsel %vm348_vm5, %v350_v62, %v346_v61  ;;  %v738_v62 = vmov 0  }
 0x9b9   :  { %v354_v2 = vmul.f32 %v351_v0, %v292_v41  ;;  %642 = vset.pattern.permute.xlu0 %v738_v62  ;;  %643 = vset.pattern.permute.xlu1 %v738_v62 }
 0x9ba   :  { %644 = vset.pattern.permute.xlu2 %v738_v62 }
 0xa16   :  { %v357_v63 = vpop.permute.xlu1 %356 }
 0xa17   :  { %v359_v1 = vmul.f32 %v357_v63, %v351_v0 }
 0xa19   :  { %361 = vrot.lane.b32.xlu2 %v359_v1, %s737_s22  ;;  %v15_v1 = vld [vmem:[%s874_s0] sm:$0xff]  ;;  %s739_s0 = smov [#allocation2]  }
 0xa1a   :  { %vm83_vm14 = vcmp.eq.s32.totalorder %v15_v1, 1  ;;  %vm443_vm15 = vcmp.eq.s32.totalorder %v15_v1, 6  ;;  %vm155_vm0 = vcmp.eq.s32.totalorder %v15_v1, 2  ;;  %vm299_vm1 = vcmp.eq.s32.totalorder %v15_v1, 4 }
 0xa1b   :  { %vm515_vm2 = vcmp.eq.s32.totalorder %v15_v1, 7  ;;  %vm587_vm3 = vcmp.eq.s32.totalorder %v15_v1, 8 }
 0xa73   :  { %v362_v3 = vpop.permute.xlu2 %361 }
 0xa74   :  { %v364_v4 = vadd.f32 %v362_v3, %v354_v2  ;;  %v84_v2 = vsel %vm83_vm14, 1, %v738_v62 }
 0xa76   :  { %683 = vtanh.f32 %v364_v4 }
 0xa7c   :  { %v684_v5 = vpop.eup %683 }
 0xa7d   :  { %367 = vrot.lane.b32.xlu0 %v684_v5, %s736_s21  ;;  %v634_v5 = vld [vmem:[%s875_s1 + $0x38] sm:$0xff]  ;;  %s604_s1 = sshll.u32 %s739_s0, 4  ;;  %s605_s1 = int_to_ptr.vmem [resolvable:$true] %s604_s1 }
 0xaef   :  { %v368_v6 = vpop.permute.xlu0 %367 }
 0xaf0   :  { %v822_v7 = vmul.f32 %v368_v6, %v351_v0 }
 0xaf2   :  { %381 = vrot.lane.b32.xlu1 %v822_v7, %s737_s22 }
 0xb64   :  { %v382_v8 = vpop.permute.xlu1 %381 }
 0xb65   :  { %629 = vmatmul.msk.f32.vlgmr.msrb.gmra.mxu1 %vm21_vm4, %v382_v8 }
 0xbe2   :  { %v402_v10 = vpop.f32.mrf.mxu1 }
 0xbe3   :  { %v405_v11 = vadd.f32 %v628_v9, %v402_v10  ;;  %v156_v10 = vsel %vm155_vm0, 1, %v738_v62 }
 0xbe5   :  { %685 = vtanh.f32 %v405_v11  ;;  %v630_v13 = vmul.f32 -1.442695, %v405_v11  ;;  %v300_v11 = vsel %vm299_vm1, 1, %v738_v62 }
 0xbe7   :  { %687 = vpow2.f32 %v630_v13 }
 0xbeb   :  { %v686_v12 = vpop.eup %685 }
 0xbec   :  { %428 = vrot.lane.b32.xlu2 %v686_v12, %s736_s21  ;;  %v516_v12 = vsel %vm515_vm2, 1, %v738_v62 }
 0xbed   :  { %v688_v14 = vpop.eup %687 }
 0xbee   :  { %v409_v15 = vadd.f32 1.0, %v688_v14 }
 0xbf0   :  { %689 = vrcp.f32 %v409_v15  ;;  %v421_v22 = vand.u32 2147483648, %v409_v15  ;;  %vm415_vm7 = vweird.f32 %v409_v15  ;;  %v419_v23 = vand.u32 2147483647, %v409_v15 }
 0xbf2   :  { %v422_v25 = vor.u32 1.1754944e-38, %v421_v22  ;;  %vm420_vm9 = vcmp.eq.f32.partialorder %v419_v23, 8.507059e+37 }
 0xbf6   :  { %v690_v16 = vpop.eup %689 }
 0xbf7   :  { %v411_v18 = vmul.f32 %v690_v16, %v409_v15  ;;  %vm416_vm6 = vweird.f32 %v690_v16 }
 0xbf8   :  { %vm417_vm8 = vmor %vm415_vm7, %vm416_vm6 }
 0xbf9   :  { %v412_v19 = vsub.f32 1.0, %v411_v18 }
 0xbfb   :  { %v413_v20 = vmul.f32 %v690_v16, %v412_v19 }
 0xbfd   :  { %v414_v21 = vadd.f32 %v690_v16, %v413_v20  ;;  %v588_v20 = vsel %vm587_vm3, 1, %v738_v62 }
 0xbff   :  { %v418_v24 = vsel %vm417_vm8, %v690_v16, %v414_v21 }
 0xc00   :  { %v423_v27 = vsel %vm420_vm9, %v422_v25, %v418_v24  ;;  %vm227_vm9 = vcmp.eq.s32.totalorder %v15_v1, 3 }
 0xc01   :  { %v426_v30 = vmul.f32 %v423_v27, %v364_v4  ;;  %v444_v4 = vsel %vm443_vm15, 1, %v738_v62 }
 0xc46   :  { %v429_v26 = vpop.permute.xlu2 %428 }
 0xc47   :  { %v431_v28 = vmul.f32 %v429_v26, %v423_v27 }
 0xc49   :  { %433 = vrot.lane.b32.xlu0 %v431_v28, %s737_s22 }
 0xcbb   :  { %v434_v31 = vpop.permute.xlu0 %433 }
 0xcbc   :  { %v436_v32 = vadd.f32 %v434_v31, %v426_v30  ;;  %v228_v31 = vsel %vm227_vm9, 1, %v738_v62 }
 0xcbe   :  { %691 = vtanh.f32 %v436_v32 }
 0xcc4   :  { %v692_v33 = vpop.eup %691 }
 0xcc5   :  { %439 = vrot.lane.b32.xlu1 %v692_v33, %s736_s21 }
 0xd37   :  { %v440_v34 = vpop.permute.xlu1 %439 }
 0xd38   :  { %v833_v35 = vmul.f32 %v440_v34, %v423_v27 }
 0xd3a   :  { %453 = vrot.lane.b32.xlu2 %v833_v35, %s737_s22 }
 0xd94   :  { %v454_v36 = vpop.permute.xlu2 %453 }
 0xd95   :  { %632 = vmatmul.msk.f32.vlgmr.msrb.gmra.mxu2 %vm21_vm4, %v454_v36 }
 0xe18   :  { %v474_v38 = vpop.f32.mrf.mxu2 }
 0xe19   :  { %v477_v39 = vadd.f32 %v631_v37, %v474_v38 }
 0xe1b   :  { %693 = vtanh.f32 %v477_v39  ;;  %v633_v41 = vmul.f32 -1.442695, %v477_v39 }
 0xe1d   :  { %695 = vpow2.f32 %v633_v41 }
 0xe21   :  { %v694_v40 = vpop.eup %693 }
 0xe22   :  { %500 = vrot.lane.b32.xlu0 %v694_v40, %s736_s21 }
 0xe23   :  { %v696_v42 = vpop.eup %695 }
 0xe24   :  { %v481_v43 = vadd.f32 1.0, %v696_v42 }
 0xe26   :  { %697 = vrcp.f32 %v481_v43  ;;  %v493_v50 = vand.u32 2147483648, %v481_v43  ;;  %vm487_vm11 = vweird.f32 %v481_v43  ;;  %v491_v51 = vand.u32 2147483647, %v481_v43 }
 0xe28   :  { %v494_v53 = vor.u32 1.1754944e-38, %v493_v50  ;;  %vm492_vm13 = vcmp.eq.f32.partialorder %v491_v51, 8.507059e+37 }
 0xe2c   :  { %v698_v45 = vpop.eup %697 }
 0xe2d   :  { %v483_v46 = vmul.f32 %v698_v45, %v481_v43  ;;  %vm488_vm10 = vweird.f32 %v698_v45 }
 0xe2e   :  { %vm489_vm12 = vmor %vm487_vm11, %vm488_vm10  ;;  %vm371_vm10 = vcmp.eq.s32.totalorder %v15_v1, 5 }
 0xe2f   :  { %v484_v47 = vsub.f32 1.0, %v483_v46 }
 0xe31   :  { %v485_v48 = vmul.f32 %v698_v45, %v484_v47 }
 0xe33   :  { %v486_v49 = vadd.f32 %v698_v45, %v485_v48 }
 0xe35   :  { %v490_v52 = vsel %vm489_vm12, %v698_v45, %v486_v49 }
 0xe36   :  { %v495_v56 = vsel %vm492_vm13, %v494_v53, %v490_v52 }
 0xe37   :  { %v498_v58 = vmul.f32 %v495_v56, %v436_v32  ;;  %v372_v32 = vsel %vm371_vm10, 1, %v738_v62 }
 0xe94   :  { %v501_v54 = vpop.permute.xlu0 %500 }
 0xe95   :  { %v503_v57 = vmul.f32 %v501_v54, %v495_v56 }
 0xe97   :  { %505 = vrot.lane.b32.xlu1 %v503_v57, %s737_s22 }
 0xf09   :  { %v506_v59 = vpop.permute.xlu1 %505 }
 0xf0a   :  { %v843_v60 = vadd.f32 %v506_v59, %v498_v58 }
 0xf0c   :  { %699 = vtanh.f32 %v843_v60 }
 0xf12   :  { %v700_v61 = vpop.eup %699 }
 0xf13   :  { %511 = vrot.lane.b32.xlu2 %v700_v61, %s736_s21 }
 0xf6d   :  { %v512_v63 = vpop.permute.xlu2 %511 }
 0xf6e   :  { %v847_v0 = vmul.f32 %v512_v63, %v495_v56 }
 0xf70   :  { %525 = vrot.lane.b32.xlu0 %v847_v0, %s737_s22 }
 0xf78   :  { %86 = vperm.xlu0 %642, %v84_v2  }
 0xf80   :  { %446 = vperm.xlu0 %642, %v444_v4  }
 0xf88   :  { %590 = vperm.xlu0 %642, %v588_v20  }
 0xfe2   :  { %v526_v3 = vpop.permute.xlu0 %525 }
 0xfe3   :  { %635 = vmatmul.msk.f32.vlgmr.msrb.gmra.mxu3 %vm21_vm4, %v526_v3 }
 0xfea   :  { %v87_v40 = vpop.permute.xlu0 %86 }
 0xfeb   :  { %vm88_vm11 = vcmp.eq.s32.totalorder %v87_v40, 1 }
 0xfec   :  { %v89_v42 = vsel %vm88_vm11, %v778_v29, 0.0 }
 0xff2   :  { %v447_v46 = vpop.permute.xlu0 %446 }
 0xff3   :  { %vm448_vm0 = vcmp.eq.s32.totalorder %v447_v46, 1 }
 0xffa   :  { %v591_v52 = vpop.permute.xlu0 %590 }
 0xffb   :  { %vm592_vm2 = vcmp.eq.s32.totalorder %v591_v52, 1 }
0x1066   :  { %v546_v6 = vpop.f32.mrf.mxu3 }
0x1067   :  { %v549_v8 = vadd.f32 %v634_v5, %v546_v6 }
0x1069   :  { %701 = vtanh.f32 %v549_v8  ;;  %v636_v13 = vmul.f32 -1.442695, %v549_v8 }
0x106b   :  { %703 = vpow2.f32 %v636_v13 }
0x106f   :  { %v702_v9 = vpop.eup %701 }
0x1070   :  { %572 = vrot.lane.b32.xlu1 %v702_v9, %s736_s21 }
0x1071   :  { %v704_v14 = vpop.eup %703 }
0x1072   :  { %v553_v15 = vadd.f32 1.0, %v704_v14 }
0x1074   :  { %705 = vrcp.f32 %v553_v15  ;;  %v565_v23 = vand.u32 2147483648, %v553_v15  ;;  %vm559_vm6 = vweird.f32 %v553_v15  ;;  %v563_v24 = vand.u32 2147483647, %v553_v15 }
0x1076   :  { %v566_v26 = vor.u32 1.1754944e-38, %v565_v23  ;;  %vm564_vm8 = vcmp.eq.f32.partialorder %v563_v24, 8.507059e+37 }
0x1078   :  { %158 = vperm.xlu1 %643, %v156_v10  }
0x107a   :  { %v706_v16 = vpop.eup %705 }
0x107b   :  { %v555_v18 = vmul.f32 %v706_v16, %v553_v15  ;;  %vm560_vm5 = vweird.f32 %v706_v16 }
0x107c   :  { %vm561_vm7 = vmor %vm559_vm6, %vm560_vm5 }
0x107d   :  { %v556_v19 = vsub.f32 1.0, %v555_v18 }
0x107f   :  { %v557_v21 = vmul.f32 %v706_v16, %v556_v19 }
0x1080   :  { %302 = vperm.xlu1 %643, %v300_v11  }
0x1081   :  { %v558_v22 = vadd.f32 %v706_v16, %v557_v21 }
0x1083   :  { %v562_v25 = vsel %vm561_vm7, %v706_v16, %v558_v22 }
0x1084   :  { %v567_v28 = vsel %vm564_vm8, %v566_v26, %v562_v25 }
0x1085   :  { %v570_v33 = vmul.f32 %v567_v28, %v843_v60 }
0x1088   :  { %518 = vperm.xlu1 %643, %v516_v12  }
0x10e2   :  { %v573_v27 = vpop.permute.xlu1 %572 }
0x10e3   :  { %v575_v30 = vmul.f32 %v573_v27, %v567_v28 }
0x10e5   :  { %577 = vrot.lane.b32.xlu2 %v575_v30, %s737_s22 }
0x10ea   :  { %v159_v38 = vpop.permute.xlu1 %158 }
0x10eb   :  { %vm160_vm12 = vcmp.eq.s32.totalorder %v159_v38, 1 }
0x10ec   :  { %v161_v45 = vsel %vm160_vm12, %v789_v55, %v89_v42 }
0x10ed   :  { %230 = vperm.xlu2 %644, %v228_v31  }
0x10f2   :  { %v303_v41 = vpop.permute.xlu1 %302 }
0x10f3   :  { %vm304_vm14 = vcmp.eq.s32.totalorder %v303_v41, 1 }
0x10f5   :  { %374 = vperm.xlu2 %644, %v372_v32  }
0x10fa   :  { %v519_v50 = vpop.permute.xlu1 %518 }
0x10fb   :  { %vm520_vm1 = vcmp.eq.s32.totalorder %v519_v50, 1 }
0x113f   :  { %v578_v34 = vpop.permute.xlu2 %577 }
0x1140   :  { %v580_v36 = vadd.f32 %v578_v34, %v570_v33 }
0x1142   :  { %707 = vtanh.f32 %v580_v36 }
0x1147   :  { %v231_v39 = vpop.permute.xlu2 %230 }
0x1148   :  { %v708_v37 = vpop.eup %707  ;;  %vm232_vm13 = vcmp.eq.s32.totalorder %v231_v39, 1 }
0x1149   :  { %583 = vrot.lane.b32.xlu2 %v708_v37, %s736_s21  ;;  %v233_v47 = vsel %vm232_vm13, %v800_v17, %v161_v45 }
0x114a   :  { %v305_v48 = vsel %vm304_vm14, %v811_v44, %v233_v47 }
0x114f   :  { %v375_v43 = vpop.permute.xlu2 %374 }
0x1150   :  { %vm376_vm15 = vcmp.eq.s32.totalorder %v375_v43, 1 }
0x1151   :  { %v377_v49 = vsel %vm376_vm15, %v822_v7, %v305_v48 }
0x1152   :  { %v449_v51 = vsel %vm448_vm0, %v833_v35, %v377_v49 }
0x1153   :  { %v521_v54 = vsel %vm520_vm1, %v847_v0, %v449_v51 }
0x11a3   :  { %v584_v53 = vpop.permute.xlu2 %583 }
0x11a4   :  { %v586_v29 = vmul.f32 %v584_v53, %v567_v28 }
0x11a6   :  { %v593_v55 = vsel %vm592_vm2, %v586_v29, %v521_v54 }
0x11a7   :  { %595 = vrot.lane.b32.xlu1 %v593_v55, %s737_s22 }
0x1219   :  { %v596_v17 = vpop.permute.xlu1 %595 }
0x121a   :  { %598 = vst.msk [vmem:[#allocation2] sm:$0xff] %vm21_vm4, %v596_v17 }
0x121b   :  { %609 = dma.vmem_to_hbm [thread:$0]  %s605_s1, 128, %s607_s14, [#allocation3]  }
0x121c   :  { %733 = dma.done.wait [#allocation3], 128  }
0x121d   :  { %734 = vsyncadd [#allocation3], 4294967168 }
0x121e   :  { %614 = vsyncpa [#allocation3], 1 }

</bundles_post_ra>
